<compile_context>
chip_gen: v5e
topology: v5e:2x2
jax: 0.10.0
libtpu: 0.0.40
codegen_flags: <defaults>
</compile_context>

<pallas_src>
import jax
import jax.numpy as jnp
from jax.experimental import pallas as pl
from jax.experimental.pallas import tpu as pltpu

# Offsets into the flat parameter slab (PyTorch storage order):
#   W1 (5,3), b1 (5), W2 (3,5), b2 (3), W3 (2,3), b3 (2)
_W1, _B1 = 0, 15
_W2, _B2 = 20, 35
_W3, _B3 = 38, 44
_NPARAMS = 46

_LANES = 128
# Max sublane-rows per block: 2048*128 batch elems -> 3 MiB in + 2 MiB out,
# ~10 MiB double-buffered; comfortably inside v7x's 64 MiB VMEM with headroom
# for the (S,128) intermediates.
_S_MAX = 2048


def mlp_kernel(p_ref, x_ref, o_ref):
    # p_ref: SMEM f32[46] parameter slab
    # x_ref: VMEM (3, S, 128)  -- feature rows; batch packed on (sublane, lane)
    # o_ref: VMEM (2, S, 128)
    xs = [x_ref[i, :, :] for i in range(3)]          # three (S, 128) tiles

    # Linear(3, 5) + Tanh  -- 15 scalar-broadcast FMAs (VPU) + 5 tanh (EUP)
    h1 = []
    for j in range(5):
        acc = p_ref[_B1 + j]
        for i in range(3):
            acc = acc + p_ref[_W1 + j * 3 + i] * xs[i]
        h1.append(jnp.tanh(acc))

    # Linear(5, 3) + ReLU  -- 15 FMAs
    h2 = []
    for j in range(3):
        acc = p_ref[_B2 + j]
        for i in range(5):
            acc = acc + p_ref[_W2 + j * 5 + i] * h1[i]
        h2.append(jnp.maximum(acc, 0.0))

    # Linear(3, 2)  -- 6 FMAs
    logits = []
    for j in range(2):
        acc = p_ref[_B3 + j]
        for i in range(3):
            acc = acc + p_ref[_W3 + j * 3 + i] * h2[i]
        logits.append(acc)

    # 2-class softmax == sigmoid of the logit difference: one exp + one recip
    # (vs. max + two exps + recip before).  Exact reciprocal keeps 1e-5 tol.
    e = jnp.exp(logits[1] - logits[0])
    p0 = pl.reciprocal(1.0 + e)
    o_ref[0, :, :] = p0
    o_ref[1, :, :] = 1.0 - p0


def _round_up(n, m):
    return -(-n // m) * m


def _choose_layout(batch):
    """Returns (s, rows_pad, grid): sublane-rows per block, padded rows, steps."""
    rows = -(-batch // _LANES)                 # 128-lane rows needed
    if rows <= 8:
        # Tiny batch: one full block (2nd-to-last block dim == full array dim).
        return rows, rows, 1
    grid = max(2, -(-rows // _S_MAX))          # >=2 steps -> both v7x TCs busy
    s = _round_up(-(-rows // grid), 8)         # 8-aligned sublane tile
    return s, s * grid, grid


def mymodel2_forward(x, params):
    w1, b1, w2, b2, w3, b3 = params
    batch = x.shape[0]

    # One flat f32 parameter slab (wrapper-side concat; folded by XLA).
    p = jnp.concatenate(
        [w1.ravel(), b1.ravel(), w2.ravel(), b2.ravel(), w3.ravel(), b3.ravel()]
    ).astype(jnp.float32)
    assert p.shape == (_NPARAMS,)

    s, rows_pad, grid = _choose_layout(batch)
    batch_pad = rows_pad * _LANES

    # Batch-on-(sublane, lane) layout.  The transpose exists only to match the
    # module's (batch, features) interface; the reshape is free (contiguous).
    x_t = x.astype(jnp.float32).T              # (3, batch)
    if batch_pad != batch:
        x_t = jnp.pad(x_t, ((0, 0), (0, batch_pad - batch)))
    x3 = x_t.reshape(3, rows_pad, _LANES)

    out3 = pl.pallas_call(
        mlp_kernel,
        out_shape=jax.ShapeDtypeStruct((2, rows_pad, _LANES), jnp.float32),
        grid=(grid,),
        in_specs=[
            pl.BlockSpec(memory_space=pltpu.MemorySpace.SMEM),   # param slab
            pl.BlockSpec((3, s, _LANES), lambda i: (0, i, 0)),   # x tile
        ],
        out_specs=pl.BlockSpec((2, s, _LANES), lambda i: (0, i, 0)),
        compiler_params=pltpu.CompilerParams(
            dimension_semantics=("parallel",),       # megacore on v7x
            vmem_limit_bytes=40 * 1024 * 1024),      # explicit, v7x-safe budget
    )(p, x3)

    out = out3.reshape(2, batch_pad)[:, :batch].T    # (batch, 2)
    return out


def init_params(key):
    # Deterministic synthetic parameters; PyTorch Linear stores weight as (out, in).
    k1, k2, k3, k4, k5, k6 = jax.random.split(key, 6)
    w1 = jax.random.normal(k1, (5, 3), jnp.float32) * 0.5
    b1 = jax.random.normal(k2, (5,), jnp.float32) * 0.1
    w2 = jax.random.normal(k3, (3, 5), jnp.float32) * 0.5
    b2 = jax.random.normal(k4, (3,), jnp.float32) * 0.1
    w3 = jax.random.normal(k5, (2, 3), jnp.float32) * 0.5
    b3 = jax.random.normal(k6, (2,), jnp.float32) * 0.1
    return (w1, b1, w2, b2, w3, b3)


def reference_forward(x, params):
    w1, b1, w2, b2, w3, b3 = params
    h1 = jnp.tanh(x @ w1.T + b1)
    h2 = jnp.maximum(h1 @ w2.T + b2, 0.0)
    logits = h2 @ w3.T + b3
    return jax.nn.softmax(logits, axis=1)


if __name__ == "__main__":
    key = jax.random.PRNGKey(0)
    kx, kx2, kp = jax.random.split(key, 3)
    params = init_params(kp)

    # Tiny batch: single-block path.
    batch = 8
    x = jax.random.normal(kx, (batch, 3), jnp.float32)
    out = jax.block_until_ready(mymodel2_forward(x, params))
    ref = reference_forward(x, params)
    assert out.shape == (batch, 2)
    assert jnp.allclose(out, ref, atol=1e-5, rtol=1e-5)
    assert jnp.allclose(jnp.sum(out, axis=1), jnp.ones((batch,)), atol=1e-5)

    # Non-divisible batch: exercises zero-padding + multi-step parallel grid.
    batch2 = 2000
    x2 = jax.random.normal(kx2, (batch2, 3), jnp.float32)
    out2 = jax.block_until_ready(mymodel2_forward(x2, params))
    ref2 = reference_forward(x2, params)
    assert out2.shape == (batch2, 2)
    assert jnp.allclose(out2, ref2, atol=1e-5, rtol=1e-5)
    assert jnp.allclose(jnp.sum(out2, axis=1), jnp.ones((batch2,)), atol=1e-5)

    print("KERNEL_OK")
</pallas_src>

<mosaic_0001>
module attributes {stable_mosaic.version = 11 : i64} {
  func.func @mlp_kernel(%arg0: i32, %arg1: memref<46xf32, #tpu.memory_space<smem>>, %arg2: memref<3x1x128xf32, #tpu.memory_space<vmem>>, %arg3: memref<2x1x128xf32, #tpu.memory_space<vmem>>) attributes {dimension_semantics = [#tpu.dimension_semantics<parallel>], iteration_bounds = array<i64: 1>, scalar_prefetch = 0 : i64, scratch_operands = 0 : i64, tpu.core_type = #tpu.core_type<tc>, window_params = [{transform_indices = @transform_0, window_bounds = array<i64: 46>}, {transform_indices = @transform_1, window_bounds = array<i64: 3, 1, 128>}, {transform_indices = @transform_2, window_bounds = array<i64: 2, 1, 128>}]} {
    %c0 = arith.constant 0 : index
    %c0_0 = arith.constant 0 : index
    %c0_1 = arith.constant 0 : index
    %0 = vector.load %arg2[%c0, %c0_0, %c0_1] : memref<3x1x128xf32, #tpu.memory_space<vmem>>, vector<1x1x128xf32>
    %1 = vector.shape_cast %0 : vector<1x1x128xf32> to vector<1x128xf32>
    %c1 = arith.constant 1 : index
    %c0_2 = arith.constant 0 : index
    %c0_3 = arith.constant 0 : index
    %2 = vector.load %arg2[%c1, %c0_2, %c0_3] : memref<3x1x128xf32, #tpu.memory_space<vmem>>, vector<1x1x128xf32>
    %3 = vector.shape_cast %2 : vector<1x1x128xf32> to vector<1x128xf32>
    %c2 = arith.constant 2 : index
    %c0_4 = arith.constant 0 : index
    %c0_5 = arith.constant 0 : index
    %4 = vector.load %arg2[%c2, %c0_4, %c0_5] : memref<3x1x128xf32, #tpu.memory_space<vmem>>, vector<1x1x128xf32>
    %5 = vector.shape_cast %4 : vector<1x1x128xf32> to vector<1x128xf32>
    %c15 = arith.constant 15 : index
    %6 = memref.load %arg1[%c15] : memref<46xf32, #tpu.memory_space<smem>>
    %c0_6 = arith.constant 0 : index
    %7 = memref.load %arg1[%c0_6] : memref<46xf32, #tpu.memory_space<smem>>
    %8 = vector.broadcast %7 : f32 to vector<1x128xf32>
    %9 = arith.mulf %8, %1 : vector<1x128xf32>
    %10 = vector.broadcast %6 : f32 to vector<1x128xf32>
    %11 = arith.addf %10, %9 : vector<1x128xf32>
    %c1_7 = arith.constant 1 : index
    %12 = memref.load %arg1[%c1_7] : memref<46xf32, #tpu.memory_space<smem>>
    %13 = vector.broadcast %12 : f32 to vector<1x128xf32>
    %14 = arith.mulf %13, %3 : vector<1x128xf32>
    %15 = arith.addf %11, %14 : vector<1x128xf32>
    %c2_8 = arith.constant 2 : index
    %16 = memref.load %arg1[%c2_8] : memref<46xf32, #tpu.memory_space<smem>>
    %17 = vector.broadcast %16 : f32 to vector<1x128xf32>
    %18 = arith.mulf %17, %5 : vector<1x128xf32>
    %19 = arith.addf %15, %18 : vector<1x128xf32>
    %20 = math.tanh %19 : vector<1x128xf32>
    %c16 = arith.constant 16 : index
    %21 = memref.load %arg1[%c16] : memref<46xf32, #tpu.memory_space<smem>>
    %c3 = arith.constant 3 : index
    %22 = memref.load %arg1[%c3] : memref<46xf32, #tpu.memory_space<smem>>
    %23 = vector.broadcast %22 : f32 to vector<1x128xf32>
    %24 = arith.mulf %23, %1 : vector<1x128xf32>
    %25 = vector.broadcast %21 : f32 to vector<1x128xf32>
    %26 = arith.addf %25, %24 : vector<1x128xf32>
    %c4 = arith.constant 4 : index
    %27 = memref.load %arg1[%c4] : memref<46xf32, #tpu.memory_space<smem>>
    %28 = vector.broadcast %27 : f32 to vector<1x128xf32>
    %29 = arith.mulf %28, %3 : vector<1x128xf32>
    %30 = arith.addf %26, %29 : vector<1x128xf32>
    %c5 = arith.constant 5 : index
    %31 = memref.load %arg1[%c5] : memref<46xf32, #tpu.memory_space<smem>>
    %32 = vector.broadcast %31 : f32 to vector<1x128xf32>
    %33 = arith.mulf %32, %5 : vector<1x128xf32>
    %34 = arith.addf %30, %33 : vector<1x128xf32>
    %35 = math.tanh %34 : vector<1x128xf32>
    %c17 = arith.constant 17 : index
    %36 = memref.load %arg1[%c17] : memref<46xf32, #tpu.memory_space<smem>>
    %c6 = arith.constant 6 : index
    %37 = memref.load %arg1[%c6] : memref<46xf32, #tpu.memory_space<smem>>
    %38 = vector.broadcast %37 : f32 to vector<1x128xf32>
    %39 = arith.mulf %38, %1 : vector<1x128xf32>
    %40 = vector.broadcast %36 : f32 to vector<1x128xf32>
    %41 = arith.addf %40, %39 : vector<1x128xf32>
    %c7 = arith.constant 7 : index
    %42 = memref.load %arg1[%c7] : memref<46xf32, #tpu.memory_space<smem>>
    %43 = vector.broadcast %42 : f32 to vector<1x128xf32>
    %44 = arith.mulf %43, %3 : vector<1x128xf32>
    %45 = arith.addf %41, %44 : vector<1x128xf32>
    %c8 = arith.constant 8 : index
    %46 = memref.load %arg1[%c8] : memref<46xf32, #tpu.memory_space<smem>>
    %47 = vector.broadcast %46 : f32 to vector<1x128xf32>
    %48 = arith.mulf %47, %5 : vector<1x128xf32>
    %49 = arith.addf %45, %48 : vector<1x128xf32>
    %50 = math.tanh %49 : vector<1x128xf32>
    %c18 = arith.constant 18 : index
    %51 = memref.load %arg1[%c18] : memref<46xf32, #tpu.memory_space<smem>>
    %c9 = arith.constant 9 : index
    %52 = memref.load %arg1[%c9] : memref<46xf32, #tpu.memory_space<smem>>
    %53 = vector.broadcast %52 : f32 to vector<1x128xf32>
    %54 = arith.mulf %53, %1 : vector<1x128xf32>
    %55 = vector.broadcast %51 : f32 to vector<1x128xf32>
    %56 = arith.addf %55, %54 : vector<1x128xf32>
    %c10 = arith.constant 10 : index
    %57 = memref.load %arg1[%c10] : memref<46xf32, #tpu.memory_space<smem>>
    %58 = vector.broadcast %57 : f32 to vector<1x128xf32>
    %59 = arith.mulf %58, %3 : vector<1x128xf32>
    %60 = arith.addf %56, %59 : vector<1x128xf32>
    %c11 = arith.constant 11 : index
    %61 = memref.load %arg1[%c11] : memref<46xf32, #tpu.memory_space<smem>>
    %62 = vector.broadcast %61 : f32 to vector<1x128xf32>
    %63 = arith.mulf %62, %5 : vector<1x128xf32>
    %64 = arith.addf %60, %63 : vector<1x128xf32>
    %65 = math.tanh %64 : vector<1x128xf32>
    %c19 = arith.constant 19 : index
    %66 = memref.load %arg1[%c19] : memref<46xf32, #tpu.memory_space<smem>>
    %c12 = arith.constant 12 : index
    %67 = memref.load %arg1[%c12] : memref<46xf32, #tpu.memory_space<smem>>
    %68 = vector.broadcast %67 : f32 to vector<1x128xf32>
    %69 = arith.mulf %68, %1 : vector<1x128xf32>
    %70 = vector.broadcast %66 : f32 to vector<1x128xf32>
    %71 = arith.addf %70, %69 : vector<1x128xf32>
    %c13 = arith.constant 13 : index
    %72 = memref.load %arg1[%c13] : memref<46xf32, #tpu.memory_space<smem>>
    %73 = vector.broadcast %72 : f32 to vector<1x128xf32>
    %74 = arith.mulf %73, %3 : vector<1x128xf32>
    %75 = arith.addf %71, %74 : vector<1x128xf32>
    %c14 = arith.constant 14 : index
    %76 = memref.load %arg1[%c14] : memref<46xf32, #tpu.memory_space<smem>>
    %77 = vector.broadcast %76 : f32 to vector<1x128xf32>
    %78 = arith.mulf %77, %5 : vector<1x128xf32>
    %79 = arith.addf %75, %78 : vector<1x128xf32>
    %80 = math.tanh %79 : vector<1x128xf32>
    %c35 = arith.constant 35 : index
    %81 = memref.load %arg1[%c35] : memref<46xf32, #tpu.memory_space<smem>>
    %c20 = arith.constant 20 : index
    %82 = memref.load %arg1[%c20] : memref<46xf32, #tpu.memory_space<smem>>
    %83 = vector.broadcast %82 : f32 to vector<1x128xf32>
    %84 = arith.mulf %83, %20 : vector<1x128xf32>
    %85 = vector.broadcast %81 : f32 to vector<1x128xf32>
    %86 = arith.addf %85, %84 : vector<1x128xf32>
    %c21 = arith.constant 21 : index
    %87 = memref.load %arg1[%c21] : memref<46xf32, #tpu.memory_space<smem>>
    %88 = vector.broadcast %87 : f32 to vector<1x128xf32>
    %89 = arith.mulf %88, %35 : vector<1x128xf32>
    %90 = arith.addf %86, %89 : vector<1x128xf32>
    %c22 = arith.constant 22 : index
    %91 = memref.load %arg1[%c22] : memref<46xf32, #tpu.memory_space<smem>>
    %92 = vector.broadcast %91 : f32 to vector<1x128xf32>
    %93 = arith.mulf %92, %50 : vector<1x128xf32>
    %94 = arith.addf %90, %93 : vector<1x128xf32>
    %c23 = arith.constant 23 : index
    %95 = memref.load %arg1[%c23] : memref<46xf32, #tpu.memory_space<smem>>
    %96 = vector.broadcast %95 : f32 to vector<1x128xf32>
    %97 = arith.mulf %96, %65 : vector<1x128xf32>
    %98 = arith.addf %94, %97 : vector<1x128xf32>
    %c24 = arith.constant 24 : index
    %99 = memref.load %arg1[%c24] : memref<46xf32, #tpu.memory_space<smem>>
    %100 = vector.broadcast %99 : f32 to vector<1x128xf32>
    %101 = arith.mulf %100, %80 : vector<1x128xf32>
    %102 = arith.addf %98, %101 : vector<1x128xf32>
    %cst = arith.constant 0.000000e+00 : f32
    %103 = vector.broadcast %cst : f32 to vector<1x128xf32>
    %104 = arith.maximumf %102, %103 : vector<1x128xf32>
    %c36 = arith.constant 36 : index
    %105 = memref.load %arg1[%c36] : memref<46xf32, #tpu.memory_space<smem>>
    %c25 = arith.constant 25 : index
    %106 = memref.load %arg1[%c25] : memref<46xf32, #tpu.memory_space<smem>>
    %107 = vector.broadcast %106 : f32 to vector<1x128xf32>
    %108 = arith.mulf %107, %20 : vector<1x128xf32>
    %109 = vector.broadcast %105 : f32 to vector<1x128xf32>
    %110 = arith.addf %109, %108 : vector<1x128xf32>
    %c26 = arith.constant 26 : index
    %111 = memref.load %arg1[%c26] : memref<46xf32, #tpu.memory_space<smem>>
    %112 = vector.broadcast %111 : f32 to vector<1x128xf32>
    %113 = arith.mulf %112, %35 : vector<1x128xf32>
    %114 = arith.addf %110, %113 : vector<1x128xf32>
    %c27 = arith.constant 27 : index
    %115 = memref.load %arg1[%c27] : memref<46xf32, #tpu.memory_space<smem>>
    %116 = vector.broadcast %115 : f32 to vector<1x128xf32>
    %117 = arith.mulf %116, %50 : vector<1x128xf32>
    %118 = arith.addf %114, %117 : vector<1x128xf32>
    %c28 = arith.constant 28 : index
    %119 = memref.load %arg1[%c28] : memref<46xf32, #tpu.memory_space<smem>>
    %120 = vector.broadcast %119 : f32 to vector<1x128xf32>
    %121 = arith.mulf %120, %65 : vector<1x128xf32>
    %122 = arith.addf %118, %121 : vector<1x128xf32>
    %c29 = arith.constant 29 : index
    %123 = memref.load %arg1[%c29] : memref<46xf32, #tpu.memory_space<smem>>
    %124 = vector.broadcast %123 : f32 to vector<1x128xf32>
    %125 = arith.mulf %124, %80 : vector<1x128xf32>
    %126 = arith.addf %122, %125 : vector<1x128xf32>
    %cst_9 = arith.constant 0.000000e+00 : f32
    %127 = vector.broadcast %cst_9 : f32 to vector<1x128xf32>
    %128 = arith.maximumf %126, %127 : vector<1x128xf32>
    %c37 = arith.constant 37 : index
    %129 = memref.load %arg1[%c37] : memref<46xf32, #tpu.memory_space<smem>>
    %c30 = arith.constant 30 : index
    %130 = memref.load %arg1[%c30] : memref<46xf32, #tpu.memory_space<smem>>
    %131 = vector.broadcast %130 : f32 to vector<1x128xf32>
    %132 = arith.mulf %131, %20 : vector<1x128xf32>
    %133 = vector.broadcast %129 : f32 to vector<1x128xf32>
    %134 = arith.addf %133, %132 : vector<1x128xf32>
    %c31 = arith.constant 31 : index
    %135 = memref.load %arg1[%c31] : memref<46xf32, #tpu.memory_space<smem>>
    %136 = vector.broadcast %135 : f32 to vector<1x128xf32>
    %137 = arith.mulf %136, %35 : vector<1x128xf32>
    %138 = arith.addf %134, %137 : vector<1x128xf32>
    %c32 = arith.constant 32 : index
    %139 = memref.load %arg1[%c32] : memref<46xf32, #tpu.memory_space<smem>>
    %140 = vector.broadcast %139 : f32 to vector<1x128xf32>
    %141 = arith.mulf %140, %50 : vector<1x128xf32>
    %142 = arith.addf %138, %141 : vector<1x128xf32>
    %c33 = arith.constant 33 : index
    %143 = memref.load %arg1[%c33] : memref<46xf32, #tpu.memory_space<smem>>
    %144 = vector.broadcast %143 : f32 to vector<1x128xf32>
    %145 = arith.mulf %144, %65 : vector<1x128xf32>
    %146 = arith.addf %142, %145 : vector<1x128xf32>
    %c34 = arith.constant 34 : index
    %147 = memref.load %arg1[%c34] : memref<46xf32, #tpu.memory_space<smem>>
    %148 = vector.broadcast %147 : f32 to vector<1x128xf32>
    %149 = arith.mulf %148, %80 : vector<1x128xf32>
    %150 = arith.addf %146, %149 : vector<1x128xf32>
    %cst_10 = arith.constant 0.000000e+00 : f32
    %151 = vector.broadcast %cst_10 : f32 to vector<1x128xf32>
    %152 = arith.maximumf %150, %151 : vector<1x128xf32>
    %c44 = arith.constant 44 : index
    %153 = memref.load %arg1[%c44] : memref<46xf32, #tpu.memory_space<smem>>
    %c38 = arith.constant 38 : index
    %154 = memref.load %arg1[%c38] : memref<46xf32, #tpu.memory_space<smem>>
    %155 = vector.broadcast %154 : f32 to vector<1x128xf32>
    %156 = arith.mulf %155, %104 : vector<1x128xf32>
    %157 = vector.broadcast %153 : f32 to vector<1x128xf32>
    %158 = arith.addf %157, %156 : vector<1x128xf32>
    %c39 = arith.constant 39 : index
    %159 = memref.load %arg1[%c39] : memref<46xf32, #tpu.memory_space<smem>>
    %160 = vector.broadcast %159 : f32 to vector<1x128xf32>
    %161 = arith.mulf %160, %128 : vector<1x128xf32>
    %162 = arith.addf %158, %161 : vector<1x128xf32>
    %c40 = arith.constant 40 : index
    %163 = memref.load %arg1[%c40] : memref<46xf32, #tpu.memory_space<smem>>
    %164 = vector.broadcast %163 : f32 to vector<1x128xf32>
    %165 = arith.mulf %164, %152 : vector<1x128xf32>
    %166 = arith.addf %162, %165 : vector<1x128xf32>
    %c45 = arith.constant 45 : index
    %167 = memref.load %arg1[%c45] : memref<46xf32, #tpu.memory_space<smem>>
    %c41 = arith.constant 41 : index
    %168 = memref.load %arg1[%c41] : memref<46xf32, #tpu.memory_space<smem>>
    %169 = vector.broadcast %168 : f32 to vector<1x128xf32>
    %170 = arith.mulf %169, %104 : vector<1x128xf32>
    %171 = vector.broadcast %167 : f32 to vector<1x128xf32>
    %172 = arith.addf %171, %170 : vector<1x128xf32>
    %c42 = arith.constant 42 : index
    %173 = memref.load %arg1[%c42] : memref<46xf32, #tpu.memory_space<smem>>
    %174 = vector.broadcast %173 : f32 to vector<1x128xf32>
    %175 = arith.mulf %174, %128 : vector<1x128xf32>
    %176 = arith.addf %172, %175 : vector<1x128xf32>
    %c43 = arith.constant 43 : index
    %177 = memref.load %arg1[%c43] : memref<46xf32, #tpu.memory_space<smem>>
    %178 = vector.broadcast %177 : f32 to vector<1x128xf32>
    %179 = arith.mulf %178, %152 : vector<1x128xf32>
    %180 = arith.addf %176, %179 : vector<1x128xf32>
    %181 = arith.subf %180, %166 : vector<1x128xf32>
    %182 = math.exp %181 : vector<1x128xf32>
    %cst_11 = arith.constant 1.000000e+00 : f32
    %183 = vector.broadcast %cst_11 : f32 to vector<1x128xf32>
    %184 = arith.addf %183, %182 : vector<1x128xf32>
    %185 = tpu.reciprocal %184 : vector<1x128xf32> -> vector<1x128xf32>
    %c0_12 = arith.constant 0 : index
    %c0_13 = arith.constant 0 : index
    %c0_14 = arith.constant 0 : index
    %186 = vector.load %arg3[%c0_12, %c0_13, %c0_14] : memref<2x1x128xf32, #tpu.memory_space<vmem>>, vector<1x1x128xf32>
    %187 = vector.shape_cast %186 : vector<1x1x128xf32> to vector<1x128xf32>
    %188 = vector.shape_cast %185 : vector<1x128xf32> to vector<1x1x128xf32>
    tpu.vector_store %arg3[%c0_12, %c0_13, %c0_14], %188 {strides = array<i32>} : memref<2x1x128xf32, #tpu.memory_space<vmem>>, vector<1x1x128xf32>,
    %cst_15 = arith.constant 1.000000e+00 : f32
    %189 = vector.broadcast %cst_15 : f32 to vector<1x128xf32>
    %190 = arith.subf %189, %185 : vector<1x128xf32>
    %c1_16 = arith.constant 1 : index
    %c0_17 = arith.constant 0 : index
    %c0_18 = arith.constant 0 : index
    %191 = vector.load %arg3[%c1_16, %c0_17, %c0_18] : memref<2x1x128xf32, #tpu.memory_space<vmem>>, vector<1x1x128xf32>
    %192 = vector.shape_cast %191 : vector<1x1x128xf32> to vector<1x128xf32>
    %193 = vector.shape_cast %190 : vector<1x128xf32> to vector<1x1x128xf32>
    tpu.vector_store %arg3[%c1_16, %c0_17, %c0_18], %193 {strides = array<i32>} : memref<2x1x128xf32, #tpu.memory_space<vmem>>, vector<1x1x128xf32>,
    return
  }
  func.func @transform_0(%arg0: i32) -> i32 {
    %c0_i32 = arith.constant 0 : i32
    %c0_i32_0 = arith.constant 0 : i32
    return %c0_i32 : i32
  }
  func.func @transform_1(%arg0: i32) -> (i32, i32, i32) {
    %c0_i32 = arith.constant 0 : i32
    %c0_i32_0 = arith.constant 0 : i32
    %c0_i32_1 = arith.constant 0 : i32
    return %c0_i32, %arg0, %c0_i32_0 : i32, i32, i32
  }
  func.func @transform_2(%arg0: i32) -> (i32, i32, i32) {
    %c0_i32 = arith.constant 0 : i32
    %c0_i32_0 = arith.constant 0 : i32
    %c0_i32_1 = arith.constant 0 : i32
    return %c0_i32, %arg0, %c0_i32_0 : i32, i32, i32
  }
}

</mosaic_0001>

<bundles_post_ra>
// kernel: tpu_custom_call.1
= control target key start
LH: loop header
LB: loop body
LE: loop exit
PB: predicated region body
PF: predicated region fallthrough
CT: control target
= control target key end

     0   :  { %7 = vsyncpa [#allocation5], 0  ;;  %s482_s0 = inlined_call_operand.hbm [shape: f32[46], index: 0, kind: input, shape index: {}]   ;;  %s483_s1 = inlined_call_operand.hbm [shape: f32[3,1,128], index: 1, kind: input, shape index: {}]   ;;  %s484_s2 = inlined_call_operand.hbm [shape: f32[2,1,128], index: 2, kind: output, shape index: {}]  }
   0x1   :  { %8 = vsyncpa [#allocation3], 0 }
   0x2   :  { %9 = vsyncpa [#allocation4], 0  ;;  %s15_s11 = sshll.u32 %s482_s0, 4  ;;  %s23_s14 = sshll.u32 %s483_s1, 4  ;;  %s16_s11 = int_to_ptr.hbm [resolvable:$true] %s15_s11  ;;  %s24_s14 = int_to_ptr.hbm [resolvable:$true] %s23_s14 }
   0x3   :  { %s390_s15 = smov [#allocation2]   ;;  %s391_s16 = smov [#allocation6]  }
   0x4   :  { %18 = dma.hbm_to_smem %s16_s11, 16, %s390_s15, [#allocation5]  }
   0x5   :  { %s25_s17 = sshll.u32 %s391_s16, 4  ;;  %s392_s18 = smov 16   ;;  %s26_s17 = int_to_ptr.vmem [resolvable:$true] %s25_s17 }
   0x6   :  { %s393_s19 = smov 1  }
   0x7   :  { %31 = dma.hbm_to_vmem [thread:$0]  %s24_s14, 48, %s26_s17, [#allocation3], %s392_s18, %s392_s18, %s393_s19  }
   0x8   :  { %384 = dma.done.wait [#allocation5], 16  }
   0x9   :  { %385 = vsyncadd [#allocation5], 4294967280 }
   0xa   :  { %386 = dma.done.wait [#allocation3], 48  }
   0xb   :  { %387 = vsyncadd [#allocation3], 4294967248 }
   0xc   :  { %40 = sfence }
   0xd   :  { %s260_s0 = sld [smem:[#allocation2 + $0xf]]  ;;  %v419_v0 = vld [vmem:[#allocation6] sm:$0x1]  ;;  %v421_v1 = vld [vmem:[#allocation6 + $0x1] sm:$0x1] }
   0xe   :  { %s47_s20 = sld [smem:[#allocation2]]  ;;  %v423_v4 = vld [vmem:[#allocation6 + $0x2] sm:$0x1] }
   0xf   :  { %s261_s1 = sld [smem:[#allocation2 + $0x1]] }
  0x10   :  { %s262_s21 = sld [smem:[#allocation2 + $0x2]] }
  0x11   :  { %s263_s22 = sld [smem:[#allocation2 + $0x10]] }
  0x12   :  { %s264_s23 = sld [smem:[#allocation2 + $0x3]] }
  0x13   :  { %s265_s24 = sld [smem:[#allocation2 + $0x4]]  ;;  %v50_v3 = vstv %s260_s0 }
  0x14   :  { %v48_v2 = vstv %s47_s20  ;;  %s266_s25 = sld [smem:[#allocation2 + $0x5]] }
  0x15   :  { %v49_v5 = vmul.f32 %v48_v2, %v419_v0  ;;  %v53_v6 = vstv %s261_s1  ;;  %s426_s26 = sld [smem:[#allocation2 + $0x11]] }
  0x16   :  { %v54_v7 = vmul.f32 %v53_v6, %v421_v1  ;;  %v57_v8 = vstv %s262_s21  ;;  %s268_s27 = sld [smem:[#allocation2 + $0x6]] }
  0x17   :  { %v51_v9 = vadd.f32 %v50_v3, %v49_v5  ;;  %s269_s28 = sld [smem:[#allocation2 + $0x7]]  ;;  %v58_v10 = vmul.f32 %v57_v8, %v423_v4  ;;  %v65_v12 = vstv %s263_s22 }
  0x18   :  { %v63_v11 = vstv %s264_s23  ;;  %s270_s29 = sld [smem:[#allocation2 + $0x8]] }
  0x19   :  { %v55_v13 = vadd.f32 %v54_v7, %v51_v9  ;;  %v64_v14 = vmul.f32 %v63_v11, %v419_v0  ;;  %v68_v15 = vstv %s265_s24  ;;  %s431_s30 = sld [smem:[#allocation2 + $0x12]] }
  0x1a   :  { %v69_v16 = vmul.f32 %v68_v15, %v421_v1  ;;  %v72_v17 = vstv %s266_s25  ;;  %s272_s3 = sld [smem:[#allocation2 + $0x9]] }
  0x1b   :  { %v66_v18 = vadd.f32 %v65_v12, %v64_v14  ;;  %v73_v19 = vmul.f32 %v72_v17, %v423_v4  ;;  %s273_s4 = sld [smem:[#allocation2 + $0xa]]  ;;  %v59_v20 = vadd.f32 %v58_v10, %v55_v13  ;;  %v80_v22 = vstv %s426_s26 }
  0x1c   :  { %v78_v21 = vstv %s268_s27  ;;  %s274_s5 = sld [smem:[#allocation2 + $0xb]] }
  0x1d   :  { %v70_v23 = vadd.f32 %v69_v16, %v66_v18  ;;  %v79_v24 = vmul.f32 %v78_v21, %v419_v0  ;;  %v83_v25 = vstv %s269_s28  ;;  %s437_s6 = sld [smem:[#allocation2 + $0x13]]  ;;  %310 = vtanh.f32 %v59_v20 }
  0x1e   :  { %v84_v26 = vmul.f32 %v83_v25, %v421_v1  ;;  %v87_v27 = vstv %s270_s29  ;;  %s276_s7 = sld [smem:[#allocation2 + $0xc]] }
  0x1f   :  { %v74_v28 = vadd.f32 %v73_v19, %v70_v23  ;;  %v81_v29 = vadd.f32 %v80_v22, %v79_v24  ;;  %v88_v30 = vmul.f32 %v87_v27, %v423_v4  ;;  %s277_s8 = sld [smem:[#allocation2 + $0xd]]  ;;  %v95_v32 = vstv %s431_s30 }
  0x20   :  { %v93_v31 = vstv %s272_s3  ;;  %s278_s9 = sld [smem:[#allocation2 + $0xe]] }
  0x21   :  { %312 = vtanh.f32 %v74_v28  ;;  %v85_v33 = vadd.f32 %v84_v26, %v81_v29  ;;  %v94_v34 = vmul.f32 %v93_v31, %v419_v0  ;;  %v98_v35 = vstv %s273_s4  ;;  %s443_s10 = sld [smem:[#allocation2 + $0x23]] }
  0x22   :  { %v99_v36 = vmul.f32 %v98_v35, %v421_v1  ;;  %v102_v37 = vstv %s274_s5  ;;  %s280_s11 = sld [smem:[#allocation2 + $0x14]] }
  0x23   :  { %v89_v38 = vadd.f32 %v88_v30, %v85_v33  ;;  %v96_v39 = vadd.f32 %v95_v32, %v94_v34  ;;  %v103_v40 = vmul.f32 %v102_v37, %v423_v4  ;;  %s281_s12 = sld [smem:[#allocation2 + $0x15]]  ;;  %v110_v42 = vstv %s437_s6  ;;  %v311_v46 = vpop.eup %310 }
  0x24   :  { %v108_v41 = vstv %s276_s7  ;;  %s282_s13 = sld [smem:[#allocation2 + $0x16]] }
  0x25   :  { %314 = vtanh.f32 %v89_v38  ;;  %v100_v43 = vadd.f32 %v99_v36, %v96_v39  ;;  %v109_v44 = vmul.f32 %v108_v41, %v419_v0  ;;  %v113_v45 = vstv %s277_s8  ;;  %s449_s14 = sld [smem:[#allocation2 + $0x17]]  ;;  %s394_s8 = smov [#allocation7]  }
  0x26   :  { %v114_v47 = vmul.f32 %v113_v45, %v421_v1  ;;  %v117_v48 = vstv %s278_s9  ;;  %s452_s15 = sld [smem:[#allocation2 + $0x18]]  ;;  %s244_s9 = sshll.u32 %s394_s8, 4  ;;  %s245_s9 = int_to_ptr.vmem [resolvable:$true] %s244_s9 }
  0x27   :  { %v313_v49 = vpop.eup %312  ;;  %v104_v50 = vadd.f32 %v103_v40, %v100_v43  ;;  %v111_v51 = vadd.f32 %v110_v42, %v109_v44  ;;  %v118_v52 = vmul.f32 %v117_v48, %v423_v4  ;;  %s455_s16 = sld [smem:[#allocation2 + $0x24]]  ;;  %v125_v54 = vstv %s443_s10 }
  0x28   :  { %v123_v53 = vstv %s280_s11  ;;  %s286_s17 = sld [smem:[#allocation2 + $0x19]] }
  0x29   :  { %316 = vtanh.f32 %v104_v50  ;;  %v115_v55 = vadd.f32 %v114_v47, %v111_v51  ;;  %v124_v56 = vmul.f32 %v311_v46, %v123_v53  ;;  %v128_v57 = vstv %s281_s12  ;;  %s287_s0 = sld [smem:[#allocation2 + $0x1a]]  ;;  %s246_s12 = sshll.u32 %s484_s2, 4  ;;  %s247_s12 = int_to_ptr.hbm [resolvable:$true] %s246_s12 }
  0x2a   :  { %v129_v58 = vmul.f32 %v313_v49, %v128_v57  ;;  %v132_v59 = vstv %s282_s13  ;;  %s288_s20 = sld [smem:[#allocation2 + $0x1b]] }
  0x2b   :  { %v315_v60 = vpop.eup %314  ;;  %v119_v61 = vadd.f32 %v118_v52, %v115_v55  ;;  %v126_v62 = vadd.f32 %v125_v54, %v124_v56  ;;  %s289_s1 = sld [smem:[#allocation2 + $0x1c]]  ;;  %v136_v1 = vstv %s449_s14 }
  0x2c   :  { %v133_v63 = vmul.f32 %v315_v60, %v132_v59  ;;  %s458_s21 = sld [smem:[#allocation2 + $0x1d]]  ;;  %v140_v11 = vstv %s452_s15 }
  0x2d   :  { %318 = vtanh.f32 %v119_v61  ;;  %v130_v0 = vadd.f32 %v129_v58, %v126_v62  ;;  %s461_s22 = sld [smem:[#allocation2 + $0x25]]  ;;  %v148_v3 = vstv %s455_s16 }
  0x2e   :  { %v146_v2 = vstv %s286_s17  ;;  %s292_s23 = sld [smem:[#allocation2 + $0x1e]] }
  0x2f   :  { %v317_v4 = vpop.eup %316  ;;  %v134_v5 = vadd.f32 %v133_v63, %v130_v0  ;;  %v147_v6 = vmul.f32 %v311_v46, %v146_v2  ;;  %v151_v7 = vstv %s287_s0  ;;  %s293_s24 = sld [smem:[#allocation2 + $0x1f]] }
  0x30   :  { %v137_v8 = vmul.f32 %v317_v4, %v136_v1  ;;  %v152_v9 = vmul.f32 %v313_v49, %v151_v7  ;;  %v155_v10 = vstv %s288_s20  ;;  %s294_s25 = sld [smem:[#allocation2 + $0x20]] }
  0x31   :  { %v149_v12 = vadd.f32 %v148_v3, %v147_v6  ;;  %v156_v13 = vmul.f32 %v315_v60, %v155_v10  ;;  %v159_v14 = vstv %s289_s1  ;;  %s465_s26 = sld [smem:[#allocation2 + $0x21]] }
  0x32   :  { %v138_v15 = vadd.f32 %v137_v8, %v134_v5  ;;  %v163_v16 = vstv %s458_s21  ;;  %s296_s27 = sld [smem:[#allocation2 + $0x22]]  ;;  %v160_v19 = vmul.f32 %v317_v4, %v159_v14 }
  0x33   :  { %v319_v17 = vpop.eup %318  ;;  %v153_v18 = vadd.f32 %v152_v9, %v149_v12  ;;  %s468_s28 = sld [smem:[#allocation2 + $0x2c]]  ;;  %v171_v22 = vstv %s461_s22 }
  0x34   :  { %v141_v20 = vmul.f32 %v319_v17, %v140_v11  ;;  %v169_v21 = vstv %s292_s23  ;;  %s298_s29 = sld [smem:[#allocation2 + $0x26]]  ;;  %v164_v24 = vmul.f32 %v319_v17, %v163_v16 }
  0x35   :  { %v157_v23 = vadd.f32 %v156_v13, %v153_v18  ;;  %v170_v25 = vmul.f32 %v311_v46, %v169_v21  ;;  %v174_v26 = vstv %s293_s24  ;;  %s299_s30 = sld [smem:[#allocation2 + $0x27]] }
  0x36   :  { %v142_v27 = vadd.f32 %v141_v20, %v138_v15  ;;  %v175_v28 = vmul.f32 %v313_v49, %v174_v26  ;;  %v178_v29 = vstv %s294_s25  ;;  %s471_s3 = sld [smem:[#allocation2 + $0x28]] }
  0x37   :  { %v161_v30 = vadd.f32 %v160_v19, %v157_v23  ;;  %v172_v31 = vadd.f32 %v171_v22, %v170_v25  ;;  %v179_v32 = vmul.f32 %v315_v60, %v178_v29  ;;  %v182_v33 = vstv %s465_s26  ;;  %s301_s4 = sld [smem:[#allocation2 + $0x2d]] }
  0x38   :  { %v143_v34 = vmax.f32 %v142_v27, 0.0  ;;  %v186_v35 = vstv %s296_s27  ;;  %s302_s5 = sld [smem:[#allocation2 + $0x29]]  ;;  %v183_v38 = vmul.f32 %v317_v4, %v182_v33 }
  0x39   :  { %v165_v36 = vadd.f32 %v164_v24, %v161_v30  ;;  %v176_v37 = vadd.f32 %v175_v28, %v172_v31  ;;  %s303_s6 = sld [smem:[#allocation2 + $0x2a]]  ;;  %v187_v39 = vmul.f32 %v319_v17, %v186_v35  ;;  %v194_v41 = vstv %s468_s28 }
  0x3a   :  { %v192_v40 = vstv %s298_s29  ;;  %s304_s7 = sld [smem:[#allocation2 + $0x2b]] }
  0x3b   :  { %v166_v42 = vmax.f32 %v165_v36, 0.0  ;;  %v180_v43 = vadd.f32 %v179_v32, %v176_v37  ;;  %v193_v44 = vmul.f32 %v192_v40, %v143_v34  ;;  %v197_v45 = vstv %s299_s30 }
  0x3c   :  { %v201_v54 = vstv %s471_s3 }
  0x3d   :  { %v184_v46 = vadd.f32 %v183_v38, %v180_v43  ;;  %v195_v47 = vadd.f32 %v194_v41, %v193_v44  ;;  %v198_v48 = vmul.f32 %v197_v45, %v166_v42  ;;  %v208_v50 = vstv %s301_s4 }
  0x3e   :  { %v206_v49 = vstv %s302_s5 }
  0x3f   :  { %v188_v51 = vadd.f32 %v187_v39, %v184_v46  ;;  %v207_v52 = vmul.f32 %v206_v49, %v143_v34  ;;  %v211_v53 = vstv %s303_s6  ;;  %v199_v58 = vadd.f32 %v198_v48, %v195_v47 }
  0x40   :  { %v212_v55 = vmul.f32 %v211_v53, %v166_v42  ;;  %v215_v56 = vstv %s304_s7 }
  0x41   :  { %v189_v57 = vmax.f32 %v188_v51, 0.0  ;;  %v209_v59 = vadd.f32 %v208_v50, %v207_v52 }
  0x43   :  { %v202_v60 = vmul.f32 %v201_v54, %v189_v57  ;;  %v213_v61 = vadd.f32 %v212_v55, %v209_v59  ;;  %v216_v62 = vmul.f32 %v215_v56, %v189_v57 }
  0x45   :  { %v203_v63 = vadd.f32 %v202_v60, %v199_v58  ;;  %v217_v0 = vadd.f32 %v216_v62, %v213_v61 }
  0x47   :  { %v218_v1 = vsub.f32 %v217_v0, %v203_v63 }
  0x49   :  { %v219_v2 = vmul.f32 1.442695, %v218_v1 }
  0x4b   :  { %320 = vpow2.f32 %v219_v2 }
  0x51   :  { %v321_v3 = vpop.eup %320 }
  0x52   :  { %v221_v4 = vadd.f32 1.0, %v321_v3 }
  0x54   :  { %322 = vrcp.f32 %v221_v4  ;;  %v233_v7 = vand.u32 2147483648, %v221_v4  ;;  %vm227_vm0 = vweird.f32 %v221_v4  ;;  %v231_v9 = vand.u32 2147483647, %v221_v4 }
  0x56   :  { %v234_v11 = vor.u32 1.1754944e-38, %v233_v7  ;;  %vm232_vm3 = vcmp.eq.f32.partialorder %v231_v9, 8.507059e+37 }
  0x5a   :  { %v323_v5 = vpop.eup %322 }
  0x5b   :  { %v223_v6 = vmul.f32 %v323_v5, %v221_v4  ;;  %vm228_vm1 = vweird.f32 %v323_v5 }
  0x5c   :  { %vm229_vm2 = vmor %vm227_vm0, %vm228_vm1 }
  0x5d   :  { %v224_v8 = vsub.f32 1.0, %v223_v6 }
  0x5f   :  { %v225_v10 = vmul.f32 %v323_v5, %v224_v8 }
  0x61   :  { %v226_v12 = vadd.f32 %v323_v5, %v225_v10 }
  0x63   :  { %v230_v13 = vsel %vm229_vm2, %v323_v5, %v226_v12 }
  0x64   :  { %v235_v14 = vsel %vm232_vm3, %v234_v11, %v230_v13 }
  0x65   :  { %236 = vst [vmem:[#allocation7] sm:$0x1] %v235_v14  ;;  %v237_v15 = vsub.f32 1.0, %v235_v14 }
  0x67   :  { %239 = vst [vmem:[#allocation7 + $0x1] sm:$0x1] %v237_v15 }
  0x68   :  { %252 = dma.vmem_to_hbm [thread:$0]  %s245_s9, 32, %s247_s12, [#allocation4], %s392_s18, %s392_s18, %s393_s19  }
  0x69   :  { %388 = dma.done.wait [#allocation4], 32  }
  0x6a   :  { %389 = vsyncadd [#allocation4], 4294967264 }
  0x6b   :  { %257 = vsyncpa [#allocation3], 1 }
  0x6c   :  { %258 = vsyncpa [#allocation4], 1 }
  0x6d   :  { %259 = vsyncpa [#allocation5], 1 }

</bundles_post_ra>
